<compile_context>
chip_gen: v7x
topology: tpu7x:2x2x1
jax: 0.10.0
libtpu: 0.0.40
codegen_flags: <defaults>
</compile_context>

<pallas_src>
import functools

import jax
import jax.numpy as jnp
from jax.experimental import pallas as pl
from jax.experimental.pallas import tpu as pltpu


def linear_clamp_kernel(x_ref, wt_ref, b_ref, o_ref):
    # Hot path: one 128x128 bf16 MXU pass (f32 accumulate), then bias add and
    # clamp on the VPU in f32 (fast path on v5e too; free on v6e/v7x).
    x = x_ref[...].astype(wt_ref.dtype)          # (M, K) bf16
    wt = wt_ref[...]                             # (K, N) bf16, pre-transposed
    b = b_ref[...]                               # (1, N) f32
    y = jnp.dot(x, wt, preferred_element_type=jnp.float32) + b
    y = jnp.maximum(y, 0.1)                      # clamp_min
    y = jnp.minimum(y, 0.2)                      # clamp_max
    o_ref[...] = y.astype(o_ref.dtype)


def prepare_params(weight, bias):
    """Run ONCE at init: torch-layout (N, K) f32 weight -> (K, N) bf16,
    bias -> (1, N) f32. Keeps the transpose and cast out of the hot path."""
    wt = jnp.asarray(weight).T.astype(jnp.bfloat16)      # (K, N)
    bias2d = jnp.asarray(bias).reshape(1, -1).astype(jnp.float32)
    return wt, bias2d


@jax.jit
def model_forward(x, wt, bias2d):
    """x: (M, K) f32, wt: (K, N) bf16 pre-transposed, bias2d: (1, N) f32."""
    M, K = x.shape
    N = wt.shape[1]

    return pl.pallas_call(
        linear_clamp_kernel,
        out_shape=jax.ShapeDtypeStruct((M, N), x.dtype),
        # ~35 KiB total resident in VMEM: no grid, no pipeline
        # prologue/epilogue, no double-buffering, single TensorCore.
        in_specs=[
            pl.BlockSpec(memory_space=pltpu.VMEM),
            pl.BlockSpec(memory_space=pltpu.VMEM),
            pl.BlockSpec(memory_space=pltpu.VMEM),
        ],
        out_specs=pl.BlockSpec(memory_space=pltpu.VMEM),
    )(x, wt, bias2d)


if __name__ == "__main__":
    key = jax.random.PRNGKey(0)
    k_x, k_w, k_b = jax.random.split(key, 3)

    in_features = 128
    out_features = 128

    # Input matching the reference: x1 = torch.randn(1, 128)
    x1 = jax.random.normal(k_x, (1, in_features), dtype=jnp.float32)

    # Deterministic parameter init mimicking torch.nn.Linear default
    # (uniform in [-1/sqrt(in), 1/sqrt(in)]).
    bound = 1.0 / jnp.sqrt(jnp.float32(in_features))
    weight = jax.random.uniform(
        k_w, (out_features, in_features), dtype=jnp.float32,
        minval=-bound, maxval=bound)
    bias = jax.random.uniform(
        k_b, (out_features,), dtype=jnp.float32,
        minval=-bound, maxval=bound)

    # One-time parameter preparation (transpose + bf16 cast), outside jit.
    wt, bias2d = prepare_params(weight, bias)

    out = model_forward(x1, wt, bias2d)
    out = jax.block_until_ready(out)
    assert out.shape == (1, out_features)

    # Strict check against a reference that matches the kernel's bf16-weight /
    # f32-accumulate numerics.
    ref_bf16 = jnp.clip(
        jnp.dot(x1.astype(jnp.bfloat16), wt,
                preferred_element_type=jnp.float32) + bias2d,
        0.1, 0.2)
    assert jnp.allclose(out, ref_bf16, atol=1e-5, rtol=1e-5)

    # Loose check against the original full-f32 torch semantics (bf16 weight
    # quantization error; clamp masks most of it).
    ref_f32 = jnp.clip(x1 @ weight.T + bias, 0.1, 0.2)
    assert jnp.allclose(out, ref_f32, atol=2e-2, rtol=2e-2)

    print("KERNEL_OK")
</pallas_src>

<mosaic_0001>
module attributes {stable_mosaic.version = 11 : i64} {
  func.func @linear_clamp_kernel(%arg0: memref<1x128xf32, #tpu.memory_space<vmem>>, %arg1: memref<128x128xbf16, #tpu.memory_space<vmem>>, %arg2: memref<1x128xf32, #tpu.memory_space<vmem>>, %arg3: memref<1x128xf32, #tpu.memory_space<vmem>>) attributes {dimension_semantics = [], scalar_prefetch = 0 : i64, scratch_operands = 0 : i64, tpu.core_type = #tpu.core_type<tc>} {
    %c0 = arith.constant 0 : index
    %c0_0 = arith.constant 0 : index
    %0 = vector.load %arg0[%c0, %c0_0] : memref<1x128xf32, #tpu.memory_space<vmem>>, vector<1x128xf32>
    %1 = arith.truncf %0 : vector<1x128xf32> to vector<1x128xbf16>
    %c0_1 = arith.constant 0 : index
    %c0_2 = arith.constant 0 : index
    %2 = vector.load %arg1[%c0_1, %c0_2] : memref<128x128xbf16, #tpu.memory_space<vmem>>, vector<128x128xbf16>
    %c0_3 = arith.constant 0 : index
    %c0_4 = arith.constant 0 : index
    %3 = vector.load %arg2[%c0_3, %c0_4] : memref<1x128xf32, #tpu.memory_space<vmem>>, vector<1x128xf32>
    %cst = arith.constant dense<0.000000e+00> : vector<1x128xf32>
    %4 = tpu.matmul %1, %2, %cst {dimension_numbers = #tpu.dot_dimension_numbers<[1], [0], [0], [1], [0, 0, 1, 1], [], []>} : vector<1x128xbf16>, vector<128x128xbf16>, vector<1x128xf32> -> vector<1x128xf32>
    %5 = arith.addf %4, %3 : vector<1x128xf32>
    %cst_5 = arith.constant 1.000000e-01 : f32
    %6 = vector.broadcast %cst_5 : f32 to vector<1x128xf32>
    %7 = arith.maximumf %5, %6 : vector<1x128xf32>
    %cst_6 = arith.constant 2.000000e-01 : f32
    %8 = vector.broadcast %cst_6 : f32 to vector<1x128xf32>
    %9 = arith.minimumf %7, %8 : vector<1x128xf32>
    %c0_7 = arith.constant 0 : index
    %c0_8 = arith.constant 0 : index
    %10 = vector.load %arg3[%c0_7, %c0_8] : memref<1x128xf32, #tpu.memory_space<vmem>>, vector<1x128xf32>
    tpu.vector_store %arg3[%c0_7, %c0_8], %9 {strides = array<i32>} : memref<1x128xf32, #tpu.memory_space<vmem>>, vector<1x128xf32>,
    return
  }
}

</mosaic_0001>

<bundles_post_ra>
// kernel: model_forward.1
= control target key start
LH: loop header
LB: loop body
LE: loop exit
PB: predicated region body
PF: predicated region fallthrough
CT: control target
= control target key end

     0   :  { %8 = vsyncpa [#allocation3], 0  ;;  %s365_s0 = inlined_call_operand.hbm [shape: f32[1,128], index: 0, kind: input, shape index: {}]   ;;  %s366_s1 = inlined_call_operand.hbm [shape: bf16[128,128], index: 1, kind: input, shape index: {}]   ;;  %s367_s2 = inlined_call_operand.vmem [shape: f32[1,128], index: 2, kind: input, shape index: {}]   ;;  %s368_s3 = inlined_call_operand.hbm [shape: f32[1,128], index: 3, kind: output, shape index: {}]  }
   0x1   :  { %9 = vsyncpa [#allocation6], 0 }
   0x2   :  { %10 = vsyncpa [#allocation4], 0  ;;  %s292_s12 = smov [#allocation2]   ;;  %s293_s14 = smov [#allocation5]  }
   0x3   :  { %s17_s13 = sshll.u32 %s292_s12, 4  ;;  %s26_s15 = sshll.u32 %s293_s14, 4  ;;  %s18_s13 = int_to_ptr.vmem [resolvable:$true] %s17_s13  ;;  %s319_s15 = int_to_ptr.vmem [resolvable:$true] %s26_s15 }
   0x4   :  { %s220_s18 = scalar_lea.hbm %s365_s0, 16 }
   0x5   :  { %p221_p0 = scmp.ne.s32.totalorder %s365_s0, %s220_s18  ;;  %p224_p1 = scmp.lt.u32.totalorder %s220_s18, %s365_s0 }
   0x7   :  { %p226_p2 = pnand %p224_p1, %p221_p0 }
   0x9   :  { %229 = shalt.err (!%p226_p2)
}
   0xa   :  { %s230_s23 = scalar_lea.vmem %s18_s13, 16  ;;  %s234_s24 = scalar_lea.vmem %s18_s13, 32 }
   0xb   :  { %p231_p3 = scmp.ne.s32.totalorder %s18_s13, %s230_s23  ;;  %p235_p4 = scmp.lt.s32.totalorder %s18_s13, %s18_s13 }
   0xc   :  { %p236_p5 = scmp.lt.s32.totalorder %s234_s24, %s230_s23 }
   0xe   :  { %p237_p6 = por %p236_p5, %p235_p4 }
  0x10   :  { %p238_p7 = pnand %p237_p6, %p231_p3 }
  0x12   :  { %241 = shalt.err (!%p238_p7)
}
  0x13   :  { %20 = dma.hbm_to_vmem [thread:$0]  %s365_s0, 16, %s18_s13, [#allocation3]  }
  0x14   :  { %s242_s29 = scalar_lea.hbm %s366_s1, 1024 }
  0x15   :  { %p243_p8 = scmp.ne.s32.totalorder %s366_s1, %s242_s29  ;;  %p246_p9 = scmp.lt.u32.totalorder %s242_s29, %s366_s1 }
  0x17   :  { %p248_p10 = pnand %p246_p9, %p243_p8 }
  0x19   :  { %251 = shalt.err (!%p248_p10)
}
  0x1a   :  { %s252_s7 = scalar_lea.vmem %s319_s15, 1024  ;;  %p257_p12 = scmp.lt.s32.totalorder %s319_s15, %s319_s15 }
  0x1b   :  { %p253_p11 = scmp.ne.s32.totalorder %s319_s15, %s252_s7  ;;  %p258_p13 = scmp.lt.s32.totalorder %s252_s7, %s252_s7 }
  0x1d   :  { %p259_p0 = por %p258_p13, %p257_p12 }
  0x1f   :  { %p260_p1 = pnand %p259_p0, %p253_p11 }
  0x21   :  { %263 = shalt.err (!%p260_p1)
}
  0x22   :  { %s294_s0 = smov 64   ;;  %s295_s8 = smov 4  }
  0x23   :  { %32 = dma.hbm_to_vmem [thread:$0]  %s366_s1, 1024, %s319_s15, [#allocation6], %s294_s0, %s294_s0, %s295_s8  }
  0x24   :  { %286 = dma.done.wait [#allocation3], 16  }
  0x25   :  { %287 = vsyncadd [#allocation3], 4294967280 }
  0x26   :  { %288 = dma.done.wait [#allocation6], 1024  }
  0x27   :  { %289 = vsyncadd [#allocation6], 4294966272  ;;  %v296_v0 = vmov 0.0   ;;  %vm297_vm0 = vmmov 0   ;;  %v212_v1 = vld [vmem:[#allocation5] sm:$0xff]   ;;  %v213_v2 = vld [vmem:[#allocation5 + $0x8] sm:$0xff]  }
  0x28   :  { %185 = vmatprep.subr.bf16.mxu0 %v296_v0  ;;  %201 = vmatprep.mubr.msk.bf16.mxu0 %vm297_vm0, %v296_v0  ;;  %v214_v3 = vld [vmem:[#allocation5 + $0x10] sm:$0xff]   ;;  %v215_v4 = vld [vmem:[#allocation5 + $0x18] sm:$0xff]   ;;  %v216_v5 = vld [vmem:[#allocation5 + $0x20] sm:$0xff]   ;;  %s298_s12 = smov [#allocation7]  }
  0x29   :  { %186 = vmatpush3.bf16.msra.mxu0 %v212_v1  ;;  %v217_v6 = vld [vmem:[#allocation5 + $0x28] sm:$0xff]   ;;  %v218_v7 = vld [vmem:[#allocation5 + $0x30] sm:$0xff]   ;;  %v219_v8 = vld [vmem:[#allocation5 + $0x38] sm:$0xff]   ;;  %s158_s13 = sshll.u32 %s298_s12, 4  ;;  %s159_s13 = int_to_ptr.vmem [resolvable:$true] %s158_s13 }
  0x2a   :  { %187 = vmatprep.subr.bf16.mxu0 %v296_v0  ;;  %v42_v9 = vld [vmem:[#allocation2] sm:$0x1]  ;;  %s264_s14 = scalar_lea.vmem %s159_s13, 16  ;;  %s268_s15 = scalar_lea.vmem %s159_s13, 32 }
  0x2b   :  { %v43_v10 = vpack.c.bf16 %v42_v9, %v42_v9  ;;  %v60_v11 = vld [vmem:[%s367_s2] sm:$0x1]  ;;  %p265_p2 = scmp.ne.s32.totalorder %s159_s13, %s264_s14  ;;  %p269_p3 = scmp.lt.s32.totalorder %s159_s13, %s159_s13 }
  0x2c   :  { %p270_p4 = scmp.lt.s32.totalorder %s268_s15, %s264_s14 }
  0x2d   :  { %188 = vmatpush3.bf16.msra.mxu0 %v213_v2 }
  0x2e   :  { %189 = vmatprep.subr.bf16.mxu0 %v296_v0  ;;  %p271_p5 = por %p270_p4, %p269_p3 }
  0x30   :  { %p272_p6 = pnand %p271_p5, %p265_p2 }
  0x31   :  { %190 = vmatpush3.bf16.msra.mxu0 %v214_v3 }
  0x32   :  { %191 = vmatprep.subr.bf16.mxu0 %v296_v0 }
  0x35   :  { %192 = vmatpush3.bf16.msra.mxu0 %v215_v4 }
  0x36   :  { %193 = vmatprep.subr.bf16.mxu0 %v296_v0 }
  0x39   :  { %194 = vmatpush3.bf16.msra.mxu0 %v216_v5 }
  0x3a   :  { %195 = vmatprep.subr.bf16.mxu0 %v296_v0 }
  0x3d   :  { %196 = vmatpush3.bf16.msra.mxu0 %v217_v6 }
  0x3e   :  { %197 = vmatprep.subr.bf16.mxu0 %v296_v0 }
  0x41   :  { %198 = vmatpush3.bf16.msra.mxu0 %v218_v7 }
  0x42   :  { %199 = vmatprep.subr.bf16.mxu0 %v296_v0 }
  0x45   :  { %200 = vmatpush3.bf16.msra.mxu0 %v219_v8 }
  0x48   :  { %202 = vmatmul.mubr.bf16.vlgmr.msra.gmra.mrb[0].mxu0 %v43_v10 }
 0x11b   :  { %v143_v12 = vpop.f32.mrb[0].mxu0 }
 0x11c   :  { %v144_v13 = vadd.f32 %v143_v12, %v60_v11  ;;  %v203_v14 = vpop.f32.mrb[1].mxu0 }
 0x11d   :  { %v146_v15 = vpop.f32.mrb[2].mxu0 }
 0x11e   :  { %v149_v16 = vmax.f32 %v144_v13, 0.1  ;;  %v204_v17 = vpop.f32.mrb[3].mxu0 }
 0x120   :  { %v150_v18 = vmin.f32 %v149_v16, 0.2 }
 0x122   :  { %151 = vst [vmem:[#allocation7] sm:$0x1] %v150_v18 }
 0x123   :  { %275 = shalt.err (!%p272_p6)
}
 0x124   :  { %s276_s17 = scalar_lea.hbm %s368_s3, 16 }
 0x125   :  { %p277_p7 = scmp.ne.s32.totalorder %s368_s3, %s276_s17  ;;  %p280_p8 = scmp.lt.u32.totalorder %s276_s17, %s368_s3 }
 0x127   :  { %p282_p9 = pnand %p280_p8, %p277_p7 }
 0x129   :  { %285 = shalt.err (!%p282_p9)
}
 0x12a   :  { %161 = dma.vmem_to_hbm [thread:$0]  %s159_s13, 16, %s368_s3, [#allocation4]  }
 0x12b   :  { %290 = dma.done.wait [#allocation4], 16  }
 0x12c   :  { %291 = vsyncadd [#allocation4], 4294967280 }
 0x12d   :  { %165 = vsyncpa [#allocation3], 1 }
 0x12e   :  { %166 = vsyncpa [#allocation6], 1 }
 0x12f   :  { %167 = vsyncpa [#allocation4], 1 }

</bundles_post_ra>
